<compile_context>
chip_gen: v6e
topology: v6e:2x2x1
jax: 0.10.0
libtpu: 0.0.40
codegen_flags: <defaults>
</compile_context>

<pallas_src>
import jax
import jax.numpy as jnp
from jax.experimental import pallas as pl
from jax.experimental.pallas import tpu as pltpu


_LANE = 1024                 # lane-dense row width (8 x the 128-lane vreg width)
_SMALL_BYTES = 2 << 20       # single-block cutoff (keeps v7x's 2nd TC busy above it)
_VMEM_LIMIT_BYTES = 48 << 20 # fits v5e/v6e (128 MiB phys) and v7x (64 MiB phys)


def _sqrt_kernel(x_ref, o_ref):
    # Elementwise sqrt of the current tile (EUP; hidden under the HBM DMAs).
    o_ref[...] = jnp.sqrt(x_ref[...])


def _tile_bytes_for_device():
    """~8 MiB tiles on v7x (3.2 TB/s HBM), ~4 MiB elsewhere."""
    try:
        kind = jax.devices()[0].device_kind.lower()
    except Exception:
        kind = ""
    return (8 << 20) if "v7" in kind else (4 << 20)


def _sqrt_tiled(x2d, tile_rows):
    """Elementwise sqrt of an (R, C) array, tiled over rows (cdiv grid)."""
    R, C = x2d.shape
    itemsize = jnp.dtype(x2d.dtype).itemsize
    n_elems = R * C
    grid = (pl.cdiv(R, tile_rows),)
    return pl.pallas_call(
        _sqrt_kernel,
        out_shape=jax.ShapeDtypeStruct((R, C), x2d.dtype),
        grid_spec=pltpu.PrefetchScalarGridSpec(
            num_scalar_prefetch=0,
            grid=grid,
            in_specs=[pl.BlockSpec((tile_rows, C), lambda i: (i, 0))],
            out_specs=pl.BlockSpec((tile_rows, C), lambda i: (i, 0)),
        ),
        compiler_params=pltpu.CompilerParams(
            dimension_semantics=("parallel",),
            vmem_limit_bytes=_VMEM_LIMIT_BYTES,
        ),
        cost_estimate=pl.CostEstimate(
            flops=0,
            transcendentals=n_elems,
            bytes_accessed=2 * n_elems * itemsize,
        ),
    )(x2d)


def sqrt_op(x):
    """Mirror of SqrtOp.forward: elementwise sqrt, same shape/dtype."""
    orig_shape = x.shape
    n = x.size
    if n == 0:
        return x
    itemsize = jnp.dtype(x.dtype).itemsize

    flat = x.reshape(-1)
    rem = n % _LANE
    if rem:
        # Rare non-lane-aligned count: small zero pad (sqrt(0)=0) so the flat
        # array reshapes to whole 1024-lane rows. Costs one extra copy; the
        # common benchmark shapes (multiples of 1024 elements) skip this.
        flat = jnp.pad(flat, (0, _LANE - rem))
    x2d = flat.reshape(-1, _LANE)
    R = x2d.shape[0]

    total_bytes = n * itemsize
    if total_bytes <= _SMALL_BYTES:
        # Single full-array block (block == full dims, so no (8,128) constraint).
        tile_rows = R
    else:
        # Byte-sized tile cap (multiple of 8 rows), and >= 2 grid steps so
        # megacore (v7x) shards the stream across both TensorCores.
        cap = max(8, (_tile_bytes_for_device() // (_LANE * itemsize)) // 8 * 8)
        half = -(-R // 2)            # cdiv(R, 2)
        half = -(-half // 8) * 8     # round up to a multiple of 8 sublanes
        tile_rows = min(cap, half)

    y2d = _sqrt_tiled(x2d, tile_rows)

    y_flat = y2d.reshape(-1)
    if rem:
        y_flat = y_flat[:n]
    return y_flat.reshape(orig_shape)


if __name__ == "__main__":
    key = jax.random.PRNGKey(0)
    k0, k1 = jax.random.split(key)

    # Small NCHW-style shape (single full-array block path).
    x_small = jax.random.uniform(
        k0, (2, 4, 16, 16), dtype=jnp.float32, minval=0.0, maxval=4.0
    )
    y_small = sqrt_op(x_small)
    jax.block_until_ready(y_small)
    assert y_small.shape == x_small.shape and y_small.dtype == x_small.dtype
    assert jnp.allclose(y_small, jnp.sqrt(x_small), rtol=1e-6, atol=1e-6)

    # Mid-size tensor (~8 MiB): exercises the tiled cdiv grid with a ragged
    # last row-block and the multi-step (megacore-shardable) path.
    x_mid = jax.random.uniform(
        k1, (3, 700, 1024), dtype=jnp.float32, minval=0.0, maxval=4.0
    )
    y_mid = sqrt_op(x_mid)
    jax.block_until_ready(y_mid)
    assert y_mid.shape == x_mid.shape and y_mid.dtype == x_mid.dtype
    assert jnp.allclose(y_mid, jnp.sqrt(x_mid), rtol=1e-6, atol=1e-6)

    print("KERNEL_OK")
</pallas_src>

<mosaic_0001>
module attributes {stable_mosaic.version = 11 : i64} {
  func.func @_sqrt_kernel(%arg0: i32, %arg1: memref<2x1024xf32, #tpu.memory_space<vmem>>, %arg2: memref<2x1024xf32, #tpu.memory_space<vmem>>) attributes {dimension_semantics = [#tpu.dimension_semantics<parallel>], iteration_bounds = array<i64: 1>, scalar_prefetch = 0 : i64, scratch_operands = 0 : i64, tpu.core_type = #tpu.core_type<tc>, window_params = [{transform_indices = @transform_0, window_bounds = array<i64: 2, 1024>}, {transform_indices = @transform_1, window_bounds = array<i64: 2, 1024>}]} {
    %c0 = arith.constant 0 : index
    %c0_0 = arith.constant 0 : index
    %0 = vector.load %arg1[%c0, %c0_0] : memref<2x1024xf32, #tpu.memory_space<vmem>>, vector<2x1024xf32>
    %1 = math.sqrt %0 : vector<2x1024xf32>
    %c0_1 = arith.constant 0 : index
    %c0_2 = arith.constant 0 : index
    %2 = vector.load %arg2[%c0_1, %c0_2] : memref<2x1024xf32, #tpu.memory_space<vmem>>, vector<2x1024xf32>
    tpu.vector_store %arg2[%c0_1, %c0_2], %1 {strides = array<i32>} : memref<2x1024xf32, #tpu.memory_space<vmem>>, vector<2x1024xf32>,
    return
  }
  func.func @transform_0(%arg0: i32) -> (i32, i32) {
    %c0_i32 = arith.constant 0 : i32
    %c0_i32_0 = arith.constant 0 : i32
    return %arg0, %c0_i32 : i32, i32
  }
  func.func @transform_1(%arg0: i32) -> (i32, i32) {
    %c0_i32 = arith.constant 0 : i32
    %c0_i32_0 = arith.constant 0 : i32
    return %arg0, %c0_i32 : i32, i32
  }
}

</mosaic_0001>

<bundles_post_ra>
// kernel: tpu_custom_call.1
= control target key start
LH: loop header
LB: loop body
LE: loop exit
PB: predicated region body
PF: predicated region fallthrough
CT: control target
= control target key end

     0   :  { %6 = vsyncpa [#allocation3], 0  ;;  %s122_s0 = inlined_call_operand.hbm [shape: f32[2,1024], index: 0, kind: input, shape index: {}]   ;;  %s123_s1 = inlined_call_operand.hbm [shape: f32[2,1024], index: 1, kind: output, shape index: {}]  }
   0x1   :  { %7 = vsyncpa [#allocation4], 0  ;;  %s104_s6 = smov [#allocation2]  }
   0x2   :  { %s14_s7 = sshll.u32 %s104_s6, 4  ;;  %s15_s7 = int_to_ptr.vmem [resolvable:$true] %s14_s7 }
   0x3   :  { %s68_s8 = scalar_lea.vmem %s15_s7, 256  ;;  %p73_p1 = scmp.lt.s32.totalorder %s15_s7, %s15_s7 }
   0x4   :  { %p69_p0 = scmp.ne.s32.totalorder %s15_s7, %s68_s8  ;;  %p74_p2 = scmp.lt.s32.totalorder %s68_s8, %s68_s8 }
   0x6   :  { %p75_p3 = por %p74_p2, %p73_p1 }
   0x8   :  { %p76_p4 = pnand %p75_p3, %p69_p0 }
   0xa   :  { %79 = shalt.err (!%p76_p4)
}
   0xb   :  { %17 = dma.hbm_to_vmem [thread:$0]  %s122_s0, 256, %s15_s7, [#allocation3]  }
   0xc   :  { %100 = dma.done.wait [#allocation3], 256  }
   0xd   :  { %101 = vsyncadd [#allocation3], 4294967040  ;;  %v21_v0 = vld [vmem:[#allocation2] sm:$0xff]  ;;  %v22_v1 = vld [vmem:[#allocation2 + $0x8] sm:$0xff]  ;;  %s105_s11 = smov [#allocation5]  }
   0xe   :  { %56 = vrsqrt.f32 %v21_v0  ;;  %vm25_vm0 = vcmp.eq.f32.partialorder %v21_v0, inf  ;;  %v28_v3 = vand.u32 2147483648, %v21_v0  ;;  %vm27_vm1 = vcmp.eq.f32.partialorder %v21_v0, 0.0  ;;  %s45_s12 = sshll.u32 %s105_s11, 4  ;;  %s46_s12 = int_to_ptr.vmem [resolvable:$true] %s45_s12 }
   0xf   :  { %58 = vrsqrt.f32 %v22_v1  ;;  %vm32_vm2 = vcmp.eq.f32.partialorder %v22_v1, inf  ;;  %v35_v6 = vand.u32 2147483648, %v22_v1  ;;  %vm34_vm3 = vcmp.eq.f32.partialorder %v22_v1, 0.0  ;;  %s80_s0 = scalar_lea.vmem %s46_s12, 256  ;;  %p85_p6 = scmp.lt.s32.totalorder %s46_s12, %s46_s12 }
  0x10   :  { %p81_p5 = scmp.ne.s32.totalorder %s46_s12, %s80_s0  ;;  %p86_p7 = scmp.lt.s32.totalorder %s80_s0, %s80_s0 }
  0x12   :  { %p87_p8 = por %p86_p7, %p85_p6 }
  0x14   :  { %p88_p9 = pnand %p87_p8, %p81_p5 }
  0x1b   :  { %v57_v2 = vpop.eup %56 }
  0x1c   :  { %v59_v4 = vpop.eup %58  ;;  %v24_v5 = vmul.f32 %v57_v2, %v21_v0 }
  0x1d   :  { %v31_v7 = vmul.f32 %v59_v4, %v22_v1 }
  0x1e   :  { %v26_v8 = vsel %vm25_vm0, %v21_v0, %v24_v5 }
  0x1f   :  { %v29_v9 = vsel %vm27_vm1, %v28_v3, %v26_v8  ;;  %v33_v10 = vsel %vm32_vm2, %v22_v1, %v31_v7 }
  0x20   :  { %37 = vst [vmem:[#allocation5] sm:$0xff] %v29_v9  ;;  %v36_v11 = vsel %vm34_vm3, %v35_v6, %v33_v10 }
  0x21   :  { %38 = vst [vmem:[#allocation5 + $0x8] sm:$0xff] %v36_v11 }
  0x22   :  { %91 = shalt.err (!%p88_p9)
}
  0x23   :  { %48 = dma.vmem_to_hbm [thread:$0]  %s46_s12, 256, %s123_s1, [#allocation4]  }
  0x24   :  { %102 = dma.done.wait [#allocation4], 256  }
  0x25   :  { %103 = vsyncadd [#allocation4], 4294967040 }
  0x26   :  { %52 = vsyncpa [#allocation3], 1 }
  0x27   :  { %53 = vsyncpa [#allocation4], 1 }

</bundles_post_ra>
